<compile_context>
chip_gen: v6e
topology: v6e:2x2x1
jax: 0.10.0
libtpu: 0.0.40
codegen_flags: <defaults>
</compile_context>

<pallas_src>
import functools

import jax
import jax.numpy as jnp
from jax.experimental import pallas as pl
from jax.experimental.pallas import tpu as pltpu


def vn_maxpool_kernel(x0_ref, x1_ref, x2_ref, w_ref, o_ref, st_sc,
                      *, score_dtype, n_valid):
    # x*_ref: (1, C, TN)  xyz-component tiles of one N-tile of one batch element
    # w_ref:  (C, C)      channel-mixing weight, nn.Linear convention W[k, c]
    # o_ref:  (1, C, 3)   pooled output for this batch (written on last N-tile)
    # st_sc:  (C, 4)      merged streaming state: col 0 = running max score,
    #                     cols 1..3 = best x/y/z so far
    t = pl.program_id(1)
    nt = pl.num_programs(1)
    C = w_ref.shape[0]
    tn = x0_ref.shape[-1]

    @pl.when(t == 0)
    def _init():
        st_sc[...] = jnp.zeros_like(st_sc)
        st_sc[:, 0:1] = jnp.full((C, 1), -jnp.inf, dtype=jnp.float32)

    # Raw tiles in their native dtype (no round-trip casts: MXU operands are cast
    # at most once, and only when score_dtype differs from the input dtype).
    x0r = x0_ref[0]
    x1r = x1_ref[0]
    x2r = x2_ref[0]
    w = w_ref[...]  # already in score_dtype (pre-cast in the wrapper)

    # Scoring: d_i = W @ x_i on the MXU, dp = sum_i x_i * d_i (f32 accumulate).
    d0 = jnp.dot(w, x0r.astype(score_dtype), preferred_element_type=jnp.float32)
    d1 = jnp.dot(w, x1r.astype(score_dtype), preferred_element_type=jnp.float32)
    d2 = jnp.dot(w, x2r.astype(score_dtype), preferred_element_type=jnp.float32)
    x0 = x0r.astype(jnp.float32)
    x1 = x1r.astype(jnp.float32)
    x2 = x2r.astype(jnp.float32)
    dp = x0 * d0 + x1 * d1 + x2 * d2                                   # (C, TN)

    lane = jax.lax.broadcasted_iota(jnp.int32, (C, tn), 1)

    # Tail masking: only emitted (statically) when N was padded up to a 128
    # multiple in the wrapper.  Padded lanes are forced to -inf so they can never
    # win the argmax; their x values are zero-padded so the gather stays clean.
    if n_valid % tn != 0:
        valid = (t * tn + lane) < n_valid
        dp = jnp.where(valid, dp, -jnp.inf)

    # Within-tile argmax (first occurrence) + bool-select gather of the winner.
    tmax = jnp.max(dp, axis=-1, keepdims=True)                          # (C, 1)
    tidx = jnp.min(jnp.where(dp == tmax, lane, tn), axis=-1, keepdims=True)
    sel = lane == tidx                                                  # bool one-hot
    g0 = jnp.sum(jnp.where(sel, x0, 0.0), axis=-1, keepdims=True)       # (C, 1)
    g1 = jnp.sum(jnp.where(sel, x1, 0.0), axis=-1, keepdims=True)
    g2 = jnp.sum(jnp.where(sel, x2, 0.0), axis=-1, keepdims=True)

    # Streaming update across N-tiles; strict '>' keeps the earliest tile on ties,
    # matching torch/jnp first-occurrence argmax.
    better = tmax > st_sc[:, 0:1]
    st_sc[:, 0:1] = jnp.where(better, tmax, st_sc[:, 0:1])
    st_sc[:, 1:2] = jnp.where(better, g0, st_sc[:, 1:2])
    st_sc[:, 2:3] = jnp.where(better, g1, st_sc[:, 2:3])
    st_sc[:, 3:4] = jnp.where(better, g2, st_sc[:, 3:4])

    @pl.when(t == nt - 1)
    def _finalize():
        o_ref[0, :, 0:1] = st_sc[:, 1:2].astype(o_ref.dtype)
        o_ref[0, :, 1:2] = st_sc[:, 2:3].astype(o_ref.dtype)
        o_ref[0, :, 2:3] = st_sc[:, 3:4].astype(o_ref.dtype)


def _vmem_capacity_bytes():
    """Per-TensorCore VMEM capacity; conservative 64 MiB (v7x) if unknown."""
    try:
        info = pltpu.get_tpu_info()
        for name in ("vmem_capacity_bytes", "vmem_size_bytes", "vmem_bytes"):
            v = getattr(info, name, None)
            if v:
                return int(v)
    except Exception:
        pass
    return 64 << 20


def _pick_tile_n(n_pad, C, B, slab_budget):
    """Largest 128-multiple divisor of n_pad whose ~16 live f32 (C, TN) slabs fit
    the per-generation budget, preferring >= 8 total grid steps for pipelining."""
    cands = [k for k in range(128, n_pad + 1, 128) if n_pad % k == 0]
    budget_tn = max(128, slab_budget // (16 * 4 * max(C, 1)))
    fits = [k for k in cands if k <= budget_tn] or [128]
    pipelined = [k for k in fits if B * (n_pad // k) >= 8]
    return max(pipelined) if pipelined else max(fits)


def vn_max_pool(x, w, *, tile_n=None, score_in_bf16=False):
    """x: [B, C, 3, N], w: [C, C] (nn.Linear weight) -> [B, C, 3]."""
    B, C, V, N = x.shape
    assert V == 3, "VNMaxPool expects the vector dimension (dim 2) to be 3"
    assert w.shape == (C, C)

    # Unaligned N: pad up to the next 128 multiple once in the wrapper; padded
    # lanes are masked to -inf inside the kernel.  Aligned N is a zero-copy view.
    n_pad = ((N + 127) // 128) * 128
    x_in = x if n_pad == N else jnp.pad(x, ((0, 0), (0, 0), (0, 0), (0, n_pad - N)))

    # Generation-aware budgets (v7x has 64 MiB VMEM/TC, v5e/v6e have 128 MiB).
    cap = _vmem_capacity_bytes()
    small_vmem = cap <= (64 << 20)
    slab_budget = (14 << 20) if small_vmem else (44 << 20)
    limit_cap = (38 << 20) if small_vmem else (88 << 20)

    if tile_n is None or tile_n % 128 != 0 or n_pad % tile_n != 0:
        tile_n = _pick_tile_n(n_pad, C, B, slab_budget)
    nt = n_pad // tile_n

    score_dtype = jnp.bfloat16 if score_in_bf16 else jnp.float32
    w_arg = w.astype(score_dtype) if w.dtype != score_dtype else w

    # Zero-copy reshape [B, C, 3, n_pad] -> [B, C, 3*n_pad]; the three xyz
    # components are the three n_pad-wide lane ranges, streamed with three
    # BlockSpecs over the same HBM buffer (x read exactly once).
    x_flat = jnp.reshape(x_in, (B, C, V * n_pad))
    x_specs = [
        pl.BlockSpec((1, C, tile_n), (lambda b, t, i=i: (b, 0, i * nt + t)))
        for i in range(V)
    ]

    kernel = functools.partial(vn_maxpool_kernel,
                               score_dtype=score_dtype, n_valid=N)

    # VMEM estimate: 3 double-buffered input streams + ~10 f32/i32 in-kernel
    # temporaries + (double-buffered) weight block + lane-padded state scratch.
    in_item = jnp.dtype(x.dtype).itemsize
    w_item = jnp.dtype(w_arg.dtype).itemsize
    vmem_est = (3 * 2 * in_item * C * tile_n
                + 10 * 4 * C * tile_n
                + 2 * w_item * C * C
                + 4 * C * 128
                + (1 << 20))
    vmem_limit = int(min(max(vmem_est, 24 << 20), limit_cap))
    if vmem_est > vmem_limit:  # oversized C even at the minimum tile
        vmem_limit = int(min(vmem_est, int(cap * 0.9)))

    return pl.pallas_call(
        kernel,
        out_shape=jax.ShapeDtypeStruct((B, C, V), x.dtype),
        grid_spec=pltpu.PrefetchScalarGridSpec(
            num_scalar_prefetch=0,
            grid=(B, nt),
            in_specs=x_specs + [pl.BlockSpec((C, C), lambda b, t: (0, 0))],
            out_specs=pl.BlockSpec((1, C, V), lambda b, t: (b, 0, 0)),
            scratch_shapes=[pltpu.VMEM((C, 4), jnp.float32)],
        ),
        compiler_params=pltpu.CompilerParams(
            dimension_semantics=("parallel", "arbitrary"),
            vmem_limit_bytes=vmem_limit),
    )(x_flat, x_flat, x_flat, w_arg)


def _reference(x, w):
    # Pure-JAX reference of the PyTorch forward (f32-accurate scoring).
    d = jnp.einsum("kc,bcin->bkin", w, x, precision=jax.lax.Precision.HIGHEST)
    dp = jnp.sum(x * d, axis=2)                        # (B, C, N)
    idx = jnp.argmax(dp, axis=-1)                      # (B, C)
    return jnp.take_along_axis(x, idx[:, :, None, None], axis=-1)[..., 0]


if __name__ == "__main__":
    key = jax.random.PRNGKey(0)
    k1, k2, k3, k4 = jax.random.split(key, 4)

    # Test 1: aligned N, auto-tiled -> streaming argmax across several N-tiles.
    B, C, V, N = 2, 8, 3, 512
    x = jax.random.uniform(k1, (B, C, V, N), dtype=jnp.float32)
    bound = 1.0 / jnp.sqrt(jnp.float32(C))
    w = jax.random.uniform(k2, (C, C), minval=-bound, maxval=bound,
                           dtype=jnp.float32)
    out = jax.block_until_ready(vn_max_pool(x, w))
    assert out.shape == (B, C, V)
    assert jnp.allclose(out, _reference(x, w), atol=1e-5, rtol=1e-5)

    # Test 2: unaligned N (wrapper pad + in-kernel tail masking), forced 2 tiles.
    B2, C2, N2 = 2, 8, 200
    x2 = jax.random.uniform(k3, (B2, C2, V, N2), dtype=jnp.float32)
    bound2 = 1.0 / jnp.sqrt(jnp.float32(C2))
    w2 = jax.random.uniform(k4, (C2, C2), minval=-bound2, maxval=bound2,
                            dtype=jnp.float32)
    out2 = jax.block_until_ready(vn_max_pool(x2, w2, tile_n=128))
    assert out2.shape == (B2, C2, V)
    assert jnp.allclose(out2, _reference(x2, w2), atol=1e-5, rtol=1e-5)

    print("KERNEL_OK")
</pallas_src>

<mosaic_0001>
module attributes {stable_mosaic.version = 11 : i64} {
  func.func @vn_maxpool_kernel(%arg0: i32, %arg1: i32, %arg2: memref<1x8x128xf32, #tpu.memory_space<vmem>>, %arg3: memref<1x8x128xf32, #tpu.memory_space<vmem>>, %arg4: memref<1x8x128xf32, #tpu.memory_space<vmem>>, %arg5: memref<8x8xf32, #tpu.memory_space<vmem>>, %arg6: memref<1x8x3xf32, #tpu.memory_space<vmem>>, %arg7: memref<8x4xf32, #tpu.memory_space<vmem>>) attributes {dimension_semantics = [#tpu.dimension_semantics<parallel>, #tpu.dimension_semantics<arbitrary>], iteration_bounds = array<i64: 2, 4>, scalar_prefetch = 0 : i64, scratch_operands = 1 : i64, tpu.core_type = #tpu.core_type<tc>, window_params = [{transform_indices = @transform_0, window_bounds = array<i64: 1, 8, 128>}, {transform_indices = @transform_1, window_bounds = array<i64: 1, 8, 128>}, {transform_indices = @transform_2, window_bounds = array<i64: 1, 8, 128>}, {pipeline_mode = #tpu.pipeline_mode<synchronous>, transform_indices = @transform_3, window_bounds = array<i64: 8, 8>}, {transform_indices = @transform_4, window_bounds = array<i64: 1, 8, 3>}]} {
    %c0_i32 = arith.constant 0 : i32
    %0 = arith.cmpi eq, %arg1, %c0_i32 : i32
    %1 = arith.extui %0 : i1 to i32
    %c0_i32_0 = arith.constant 0 : i32
    %2 = arith.cmpi ne, %1, %c0_i32_0 : i32
    scf.if %2 {
      %cst_37 = arith.constant 0.000000e+00 : f32
      %58 = vector.broadcast %cst_37 : f32 to vector<8x4xf32>
      %c0_38 = arith.constant 0 : index
      %c0_39 = arith.constant 0 : index
      %59 = vector.load %arg7[%c0_38, %c0_39] : memref<8x4xf32, #tpu.memory_space<vmem>>, vector<8x4xf32>
      tpu.vector_store %arg7[%c0_38, %c0_39], %58 {strides = array<i32>} : memref<8x4xf32, #tpu.memory_space<vmem>>, vector<8x4xf32>,
      %cst_40 = arith.constant 0xFF800000 : f32
      %60 = vector.broadcast %cst_40 : f32 to vector<8x1xf32>
      %c0_41 = arith.constant 0 : index
      %c0_42 = arith.constant 0 : index
      %61 = vector.load %arg7[%c0_41, %c0_42] : memref<8x4xf32, #tpu.memory_space<vmem>>, vector<8x1xf32>
      tpu.vector_store %arg7[%c0_41, %c0_42], %60 {strides = array<i32>} : memref<8x4xf32, #tpu.memory_space<vmem>>, vector<8x1xf32>,
    } else {
    }
    %c0 = arith.constant 0 : index
    %c0_1 = arith.constant 0 : index
    %c0_2 = arith.constant 0 : index
    %3 = vector.load %arg2[%c0, %c0_1, %c0_2] : memref<1x8x128xf32, #tpu.memory_space<vmem>>, vector<1x8x128xf32>
    %4 = vector.shape_cast %3 : vector<1x8x128xf32> to vector<8x128xf32>
    %c0_3 = arith.constant 0 : index
    %c0_4 = arith.constant 0 : index
    %c0_5 = arith.constant 0 : index
    %5 = vector.load %arg3[%c0_3, %c0_4, %c0_5] : memref<1x8x128xf32, #tpu.memory_space<vmem>>, vector<1x8x128xf32>
    %6 = vector.shape_cast %5 : vector<1x8x128xf32> to vector<8x128xf32>
    %c0_6 = arith.constant 0 : index
    %c0_7 = arith.constant 0 : index
    %c0_8 = arith.constant 0 : index
    %7 = vector.load %arg4[%c0_6, %c0_7, %c0_8] : memref<1x8x128xf32, #tpu.memory_space<vmem>>, vector<1x8x128xf32>
    %8 = vector.shape_cast %7 : vector<1x8x128xf32> to vector<8x128xf32>
    %c0_9 = arith.constant 0 : index
    %c0_10 = arith.constant 0 : index
    %9 = vector.load %arg5[%c0_9, %c0_10] : memref<8x8xf32, #tpu.memory_space<vmem>>, vector<8x8xf32>
    %cst = arith.constant dense<0.000000e+00> : vector<8x128xf32>
    %10 = tpu.matmul %9, %4, %cst {dimension_numbers = #tpu.dot_dimension_numbers<[1], [0], [0], [1], [0, 0, 1, 1], [], []>} : vector<8x8xf32>, vector<8x128xf32>, vector<8x128xf32> -> vector<8x128xf32>
    %cst_11 = arith.constant dense<0.000000e+00> : vector<8x128xf32>
    %11 = tpu.matmul %9, %6, %cst_11 {dimension_numbers = #tpu.dot_dimension_numbers<[1], [0], [0], [1], [0, 0, 1, 1], [], []>} : vector<8x8xf32>, vector<8x128xf32>, vector<8x128xf32> -> vector<8x128xf32>
    %cst_12 = arith.constant dense<0.000000e+00> : vector<8x128xf32>
    %12 = tpu.matmul %9, %8, %cst_12 {dimension_numbers = #tpu.dot_dimension_numbers<[1], [0], [0], [1], [0, 0, 1, 1], [], []>} : vector<8x8xf32>, vector<8x128xf32>, vector<8x128xf32> -> vector<8x128xf32>
    %13 = arith.mulf %4, %10 : vector<8x128xf32>
    %14 = arith.mulf %6, %11 : vector<8x128xf32>
    %15 = arith.addf %13, %14 : vector<8x128xf32>
    %16 = arith.mulf %8, %12 : vector<8x128xf32>
    %17 = arith.addf %15, %16 : vector<8x128xf32>
    %18 = tpu.iota {dimensions = array<i32: 1>} : vector<8x128xi32>
    %cst_13 = arith.constant dense<0xFF800000> : vector<8xf32>
    %19 = vector.multi_reduction <maximumf>, %17, %cst_13 [1] : vector<8x128xf32> to vector<8xf32>
    %20 = vector.shape_cast %19 : vector<8xf32> to vector<8x1xf32>
    %21 = vector.broadcast %20 : vector<8x1xf32> to vector<8x128xf32>
    %22 = arith.cmpf oeq, %17, %21 : vector<8x128xf32>
    %c128_i32 = arith.constant 128 : i32
    %23 = vector.broadcast %c128_i32 : i32 to vector<8x128xi32>
    %24 = arith.select %22, %18, %23 : vector<8x128xi1>, vector<8x128xi32>
    %cst_14 = arith.constant dense<2147483647> : vector<8xi32>
    %25 = vector.multi_reduction <minsi>, %24, %cst_14 [1] : vector<8x128xi32> to vector<8xi32>
    %26 = vector.shape_cast %25 : vector<8xi32> to vector<8x1xi32>
    %27 = vector.broadcast %26 : vector<8x1xi32> to vector<8x128xi32>
    %28 = arith.cmpi eq, %18, %27 : vector<8x128xi32>
    %cst_15 = arith.constant 0.000000e+00 : f32
    %29 = vector.broadcast %cst_15 : f32 to vector<8x128xf32>
    %30 = arith.select %28, %4, %29 : vector<8x128xi1>, vector<8x128xf32>
    %cst_16 = arith.constant dense<0.000000e+00> : vector<8xf32>
    %31 = vector.multi_reduction <add>, %30, %cst_16 [1] : vector<8x128xf32> to vector<8xf32>
    %32 = vector.shape_cast %31 : vector<8xf32> to vector<8x1xf32>
    %cst_17 = arith.constant 0.000000e+00 : f32
    %33 = vector.broadcast %cst_17 : f32 to vector<8x128xf32>
    %34 = arith.select %28, %6, %33 : vector<8x128xi1>, vector<8x128xf32>
    %cst_18 = arith.constant dense<0.000000e+00> : vector<8xf32>
    %35 = vector.multi_reduction <add>, %34, %cst_18 [1] : vector<8x128xf32> to vector<8xf32>
    %36 = vector.shape_cast %35 : vector<8xf32> to vector<8x1xf32>
    %cst_19 = arith.constant 0.000000e+00 : f32
    %37 = vector.broadcast %cst_19 : f32 to vector<8x128xf32>
    %38 = arith.select %28, %8, %37 : vector<8x128xi1>, vector<8x128xf32>
    %cst_20 = arith.constant dense<0.000000e+00> : vector<8xf32>
    %39 = vector.multi_reduction <add>, %38, %cst_20 [1] : vector<8x128xf32> to vector<8xf32>
    %40 = vector.shape_cast %39 : vector<8xf32> to vector<8x1xf32>
    %c0_21 = arith.constant 0 : index
    %c0_22 = arith.constant 0 : index
    %41 = vector.load %arg7[%c0_21, %c0_22] : memref<8x4xf32, #tpu.memory_space<vmem>>, vector<8x1xf32>
    %42 = arith.cmpf ogt, %20, %41 : vector<8x1xf32>
    %c0_23 = arith.constant 0 : index
    %c0_24 = arith.constant 0 : index
    %43 = vector.load %arg7[%c0_23, %c0_24] : memref<8x4xf32, #tpu.memory_space<vmem>>, vector<8x1xf32>
    %44 = arith.select %42, %20, %43 : vector<8x1xi1>, vector<8x1xf32>
    %c0_25 = arith.constant 0 : index
    %c0_26 = arith.constant 0 : index
    %45 = vector.load %arg7[%c0_25, %c0_26] : memref<8x4xf32, #tpu.memory_space<vmem>>, vector<8x1xf32>
    tpu.vector_store %arg7[%c0_25, %c0_26], %44 {strides = array<i32>} : memref<8x4xf32, #tpu.memory_space<vmem>>, vector<8x1xf32>,
    %c0_27 = arith.constant 0 : index
    %c1 = arith.constant 1 : index
    %46 = vector.load %arg7[%c0_27, %c1] : memref<8x4xf32, #tpu.memory_space<vmem>>, vector<8x1xf32>
    %47 = arith.select %42, %32, %46 : vector<8x1xi1>, vector<8x1xf32>
    %c0_28 = arith.constant 0 : index
    %c1_29 = arith.constant 1 : index
    %48 = vector.load %arg7[%c0_28, %c1_29] : memref<8x4xf32, #tpu.memory_space<vmem>>, vector<8x1xf32>
    tpu.vector_store %arg7[%c0_28, %c1_29], %47 {strides = array<i32>} : memref<8x4xf32, #tpu.memory_space<vmem>>, vector<8x1xf32>,
    %c0_30 = arith.constant 0 : index
    %c2 = arith.constant 2 : index
    %49 = vector.load %arg7[%c0_30, %c2] : memref<8x4xf32, #tpu.memory_space<vmem>>, vector<8x1xf32>
    %50 = arith.select %42, %36, %49 : vector<8x1xi1>, vector<8x1xf32>
    %c0_31 = arith.constant 0 : index
    %c2_32 = arith.constant 2 : index
    %51 = vector.load %arg7[%c0_31, %c2_32] : memref<8x4xf32, #tpu.memory_space<vmem>>, vector<8x1xf32>
    tpu.vector_store %arg7[%c0_31, %c2_32], %50 {strides = array<i32>} : memref<8x4xf32, #tpu.memory_space<vmem>>, vector<8x1xf32>,
    %c0_33 = arith.constant 0 : index
    %c3 = arith.constant 3 : index
    %52 = vector.load %arg7[%c0_33, %c3] : memref<8x4xf32, #tpu.memory_space<vmem>>, vector<8x1xf32>
    %53 = arith.select %42, %40, %52 : vector<8x1xi1>, vector<8x1xf32>
    %c0_34 = arith.constant 0 : index
    %c3_35 = arith.constant 3 : index
    %54 = vector.load %arg7[%c0_34, %c3_35] : memref<8x4xf32, #tpu.memory_space<vmem>>, vector<8x1xf32>
    tpu.vector_store %arg7[%c0_34, %c3_35], %53 {strides = array<i32>} : memref<8x4xf32, #tpu.memory_space<vmem>>, vector<8x1xf32>,
    %c3_i32 = arith.constant 3 : i32
    %55 = arith.cmpi eq, %arg1, %c3_i32 : i32
    %56 = arith.extui %55 : i1 to i32
    %c0_i32_36 = arith.constant 0 : i32
    %57 = arith.cmpi ne, %56, %c0_i32_36 : i32
    scf.if %57 {
      %c0_37 = arith.constant 0 : index
      %c1_38 = arith.constant 1 : index
      %58 = vector.load %arg7[%c0_37, %c1_38] : memref<8x4xf32, #tpu.memory_space<vmem>>, vector<8x1xf32>
      %c0_39 = arith.constant 0 : index
      %c0_40 = arith.constant 0 : index
      %c0_41 = arith.constant 0 : index
      %59 = vector.load %arg6[%c0_39, %c0_40, %c0_41] : memref<1x8x3xf32, #tpu.memory_space<vmem>>, vector<1x8x1xf32>
      %60 = vector.shape_cast %59 : vector<1x8x1xf32> to vector<8x1xf32>
      %61 = vector.shape_cast %58 : vector<8x1xf32> to vector<1x8x1xf32>
      tpu.vector_store %arg6[%c0_39, %c0_40, %c0_41], %61 {strides = array<i32>} : memref<1x8x3xf32, #tpu.memory_space<vmem>>, vector<1x8x1xf32>,
      %c0_42 = arith.constant 0 : index
      %c2_43 = arith.constant 2 : index
      %62 = vector.load %arg7[%c0_42, %c2_43] : memref<8x4xf32, #tpu.memory_space<vmem>>, vector<8x1xf32>
      %c0_44 = arith.constant 0 : index
      %c0_45 = arith.constant 0 : index
      %c1_46 = arith.constant 1 : index
      %63 = vector.load %arg6[%c0_44, %c0_45, %c1_46] : memref<1x8x3xf32, #tpu.memory_space<vmem>>, vector<1x8x1xf32>
      %64 = vector.shape_cast %63 : vector<1x8x1xf32> to vector<8x1xf32>
      %65 = vector.shape_cast %62 : vector<8x1xf32> to vector<1x8x1xf32>
      tpu.vector_store %arg6[%c0_44, %c0_45, %c1_46], %65 {strides = array<i32>} : memref<1x8x3xf32, #tpu.memory_space<vmem>>, vector<1x8x1xf32>,
      %c0_47 = arith.constant 0 : index
      %c3_48 = arith.constant 3 : index
      %66 = vector.load %arg7[%c0_47, %c3_48] : memref<8x4xf32, #tpu.memory_space<vmem>>, vector<8x1xf32>
      %c0_49 = arith.constant 0 : index
      %c0_50 = arith.constant 0 : index
      %c2_51 = arith.constant 2 : index
      %67 = vector.load %arg6[%c0_49, %c0_50, %c2_51] : memref<1x8x3xf32, #tpu.memory_space<vmem>>, vector<1x8x1xf32>
      %68 = vector.shape_cast %67 : vector<1x8x1xf32> to vector<8x1xf32>
      %69 = vector.shape_cast %66 : vector<8x1xf32> to vector<1x8x1xf32>
      tpu.vector_store %arg6[%c0_49, %c0_50, %c2_51], %69 {strides = array<i32>} : memref<1x8x3xf32, #tpu.memory_space<vmem>>, vector<1x8x1xf32>,
    } else {
    }
    return
  }
  func.func @transform_0(%arg0: i32, %arg1: i32) -> (i32, i32, i32) {
    %c0_i32 = arith.constant 0 : i32
    %0 = arith.addi %c0_i32, %arg1 : i32
    %c0_i32_0 = arith.constant 0 : i32
    %c0_i32_1 = arith.constant 0 : i32
    return %arg0, %c0_i32_0, %0 : i32, i32, i32
  }
  func.func @transform_1(%arg0: i32, %arg1: i32) -> (i32, i32, i32) {
    %c4_i32 = arith.constant 4 : i32
    %0 = arith.addi %c4_i32, %arg1 : i32
    %c0_i32 = arith.constant 0 : i32
    %c0_i32_0 = arith.constant 0 : i32
    return %arg0, %c0_i32, %0 : i32, i32, i32
  }
  func.func @transform_2(%arg0: i32, %arg1: i32) -> (i32, i32, i32) {
    %c8_i32 = arith.constant 8 : i32
    %0 = arith.addi %c8_i32, %arg1 : i32
    %c0_i32 = arith.constant 0 : i32
    %c0_i32_0 = arith.constant 0 : i32
    return %arg0, %c0_i32, %0 : i32, i32, i32
  }
  func.func @transform_3(%arg0: i32, %arg1: i32) -> (i32, i32) {
    %c0_i32 = arith.constant 0 : i32
    %c0_i32_0 = arith.constant 0 : i32
    %c0_i32_1 = arith.constant 0 : i32
    return %c0_i32, %c0_i32_0 : i32, i32
  }
  func.func @transform_4(%arg0: i32, %arg1: i32) -> (i32, i32, i32) {
    %c0_i32 = arith.constant 0 : i32
    %c0_i32_0 = arith.constant 0 : i32
    %c0_i32_1 = arith.constant 0 : i32
    return %arg0, %c0_i32, %c0_i32_0 : i32, i32, i32
  }
}

</mosaic_0001>

<bundles_post_ra>
// kernel: tpu_custom_call.1
= control target key start
LH: loop header
LB: loop body
LE: loop exit
PB: predicated region body
PF: predicated region fallthrough
CT: control target
= control target key end

     0   :  { %s1611_s0 = inlined_call_operand.hbm [shape: f32[2,8,1536], index: 0, kind: input, shape index: {}]   ;;  %s1612_s1 = inlined_call_operand.hbm [shape: f32[2,8,1536], index: 1, kind: input, shape index: {}]   ;;  %s1613_s2 = inlined_call_operand.hbm [shape: f32[2,8,1536], index: 2, kind: input, shape index: {}]   ;;  %s1614_s3 = inlined_call_operand.hbm [shape: f32[8,8], index: 3, kind: input, shape index: {}]   ;;  %s1615_s4 = inlined_call_operand.vmem [shape: f32[2,8,3], index: 4, kind: output, shape index: {}]  }
   0x1   :  { %1626 = sst [smem:[#allocation20_spill]] %s1611_s0 }
   0x2   :  { %1627 = sst [smem:[#allocation21_spill]] %s1612_s1 }
   0x3   :  { %1628 = sst [smem:[#allocation22_spill]] %s1613_s2 }
   0x4   :  { %1629 = sst [smem:[#allocation23_spill]] %s1614_s3 }
   0x5   :  { %1630 = sst [smem:[#allocation24_spill]] %s1615_s4 }
   0x6   :  { %9 = vsyncpa [#allocation4], 0 }
   0x7   :  { %11 = vsyncpa [#allocation4 + $0x1], 0 }
   0x8   :  { %12 = vsyncpa [#allocation6], 0 }
   0x9   :  { %14 = vsyncpa [#allocation6 + $0x1], 0 }
   0xa   :  { %15 = vsyncpa [#allocation9], 0  ;;  %s1267_s15 = smov 0   ;;  %s1269_s16 = smov 0  }
   0xb   :  { %s1271_s17 = smov 0   ;;  %s1273_s18 = smov 0  }
   0xc   :  { %s1275_s19 = smov 0   ;;  %s1277_s20 = smov 0  }
   0xd   :  { %s1279_s21 = smov 0   ;;  %s1281_s22 = smov 0  }
   0xe   :  { %s1283_s23 = smov 0   ;;  %s1285_s24 = smov 0  }
   0xf   :  { %s1287_s25 = smov 0   ;;  %s1289_s26 = smov 0  }
  0x10   :  { %s1291_s27 = smov 0   ;;  %s1293_s28 = smov 0  }
  0x11 LB: > { %1631 = sst [smem:[#allocation14_spill]] %s1173_s15  ;;  %s30_s29 = sadd.s32 1, %s1217_s26  ;;  %s1225_s28 = sphi %s1293_s28, %s21_s28   ;;  %s1221_s27 = sphi %s1291_s27, %s1680_s27   ;;  %s1217_s26 = sphi %s1289_s26, %s1679_s26   ;;  %s1213_s25 = sphi %s1287_s25, %s1678_s25   ;;  %s1209_s24 = sphi %s1285_s24, %s1677_s24   ;;  %s1205_s23 = sphi %s1283_s23, %s1676_s23   ;;  %s1201_s22 = sphi %s1281_s22, %s1675_s22   ;;  %s1197_s21 = sphi %s1279_s21, %s1674_s21   ;;  %s1193_s20 = sphi %s1277_s20, %s1673_s20   ;;  %s1189_s19 = sphi %s1275_s19, %s1672_s19   ;;  %s1185_s18 = sphi %s1273_s18, %s1671_s18   ;;  %s1181_s17 = sphi %s1271_s17, %s1670_s17   ;;  %s1177_s16 = sphi %s1269_s16, %s1669_s16   ;;  %s1173_s15 = sphi %s1267_s15, %s1666_s15  }
  0x12   : > { %1632 = sst [smem:[#allocation15_spill]] %s1177_s16  ;;  %s33_s30 = sadd.s32 1, %s1221_s27 }
  0x13   : > { %1633 = sst [smem:[#allocation16_spill]] %s1209_s24  ;;  %p31_p0 = scmp.ge.s32.totalorder %s30_s29, 4 }
  0x14   : > { %1634 = sst [smem:[#allocation17_spill]] %s1213_s25  ;;  %p1620_p1 = scmp.eq.s32.totalorder %s1225_s28, 0 }
  0x15   : > { %s65_s5 = sadd.s32 4, %s1217_s26  ;;  %s72_s6 = sadd.s32 1, %s1193_s20 }
  0x16   : > { %s1682_s29 = smov (%p31_p0, %s30_s29), 0  ;;  %s1684_s30 = smov (!%p31_p0, %s33_s30), %s1221_s27 }
  0x17   : > { %1635 = sst [smem:[#allocation18_spill]] %s1682_s29  ;;  %s66_s7 = sadd.s32 4, %s1682_s29 }
  0x18   : > { %p79_p2 = scmp.ne.s32.totalorder %s1193_s20, %s1189_s19  ;;  %p35_p3 = scmp.ge.s32.totalorder %s1684_s30, 2 }
  0x19   : > { %s68_s8 = ssub.s32 %s65_s5, %s66_s7  ;;  %p85_p5 = scmp.ne.s32.totalorder %s1189_s19, %s1185_s18 }
  0x1a   : > { %p1350_p4 = por %p79_p2, %p1620_p1  ;;  %s1686_s30 = smov (%p35_p3, %s1684_s30), 0 }
  0x1b   : > { %1637 = sst [smem:[#allocation19_spill]] %s1686_s30  ;;  %s95_s10 = sadd.s32 8, %s1217_s26 }
  0x1c   : > { %s96_s11 = sadd.s32 8, %s1682_s29  ;;  %s1362_s12 = ssub.s32 %s1221_s27, %s1686_s30 }
  0x1d   : > { %s98_s13 = ssub.s32 %s95_s10, %s96_s11  ;;  %s69_s14 = sor.u32 %s68_s8, %s1362_s12 }
  0x1e   : > { %s99_s5 = sor.u32 %s98_s13, %s1362_s12  ;;  %p70_p6 = scmp.eq.s32.totalorder %s69_s14, 0 }
  0x1f   : > { %p1366_p7 = scmp.eq.s32.totalorder %s99_s5, 0  ;;  %p1619_p8 = scmp.lt.s32.totalorder %s1225_s28, 8 }
  0x20   : > { %s1372_s24 = scalar_select %p70_p6, %s1193_s20, %s72_s6  }
  0x21   : > { %s835_s4 = smul.u32 12, %s1221_s27  ;;  %s217_s25 = sand.u32 1, %s1225_s28  }
  0x22   : > { %s219_s2 = sand.u32 1, %s1193_s20   ;;  %s1639_s1 = sld [smem:[#allocation21_spill]] }
  0x23   : > { %s206_s30 = sadd.s32 %s1217_s26, %s835_s4  ;;  %s797_s15 = sshll.u32 %s219_s2, 3 }
  0x24   : > { %s1378_s16 = sshll.u32 %s206_s30, 7  ;;  %s221_s13 = scalar_lea.vmem [#allocation5], %s797_s15 }
  0x25   : > { %s231_s14 = sshll.u32 %s221_s13, 4  ;;  %p1388_p9 = pnand %p1619_p8, %p1350_p4  ;;  %s232_s14 = int_to_ptr.vmem [resolvable:$true] %s231_s14 }
  0x26   : > { %s1392_s4 = scalar_lea.sflag [#allocation6], %s217_s25  ;;  %s1000_s2 = scalar_lea.vmem %s232_s14, 128 }
  0x27   : > { %p989_p10 = pneg %p1388_p9  ;;  %p1001_p11 = scmp.ne.s32.totalorder %s232_s14, %s1000_s2 }
  0x28   : > { %s692_s11 = scalar_lea.hbm %s1639_s1, %s1378_s16  ;;  %s1227_s30 = smov [#allocation5]  }
  0x29   : > { %s693_s5 = scalar_lea.hbm %s692_s11, 512  ;;  %p1003_p12 = pnand %p1001_p11, %p989_p10 }
  0x2a   : > { %s1005_s15 = sshll.u32 %s1227_s30, 4  ;;  %s1006_s15 = int_to_ptr.vmem [resolvable:$false] %s1005_s15 }
  0x2b   : > { %p1004_p13 = pneg %p1003_p12  ;;  %s1007_s8 = scalar_lea.vmem %s1006_s15, 256 }
  0x2c   : > { %p1008_p0 = scmp.lt.s32.totalorder %s232_s14, %s1006_s15  ;;  %p1009_p2 = scmp.lt.s32.totalorder %s1007_s8, %s1000_s2 }
  0x2e   : > { %p1010_p3 = por %p1009_p2, %p1008_p0 }
  0x30   : > { %p1011_p4 = pnand %p1010_p3, %p1004_p13 }
  0x32   : > { %1014 = shalt.err (!%p1011_p4)
}
  0x33   : > { %856 = dma.hbm_to_vmem [thread:$0]  (!%p1388_p9), %s693_s5, 128, %s232_s14, %s1392_s4  }
  0x34   : > { %s1621_s25 = sadd.s32 4294967295, %s1225_s28   ;;  %p792_p6 = scmp.ge.s32.totalorder %s1225_s28, 1 }
  0x35   : > { %p1403_p10 = scmp.eq.s32.totalorder %s1621_s25, 0  ;;  %p173_p11 = scmp.lt.s32.totalorder %s1225_s28, 9 }
  0x36   : > { %s1228_s13 = smov [#allocation8]   ;;  %s38_s5 = ssub.s32 %s1217_s26, %s1682_s29 }
  0x37   : > { %s1641_s9 = scalar_select %p1403_p10, 1, 0 }
  0x38   : > { %p1413_p12 = por %p85_p5, %p1403_p10  ;;  %p1417_p13 = pnand %p792_p6, %p173_p11 }
  0x39   : > { %s186_s14 = sshll.u32 %s1228_s13, 4  ;;  %s187_s14 = int_to_ptr.vmem [resolvable:$true] %s186_s14 }
  0x3a   : > { %s1642_s10 = scalar_select %p1413_p12, 1, 0 }
  0x3b   : > { %p846_p9 = pneg %p1417_p13  ;;  %s1027_s6 = scalar_lea.vmem %s187_s14, 128 }
  0x3c   : > { %p1028_p3 = scmp.ne.s32.totalorder %s187_s14, %s1027_s6  ;;  %p1035_p8 = scmp.lt.s32.totalorder %s187_s14, %s187_s14 }
  0x3d   : > { %p847_p0 = pnand %p846_p9, %p1403_p10  ;;  %p1036_p1 = scmp.lt.s32.totalorder %s1027_s6, %s1027_s6 }
  0x3f   : > { %p1018_p2 = pneg %p847_p0  ;;  %p1037_p6 = por %p1036_p1, %p1035_p8 }
  0x41   : > { %p1030_p5 = pnand %p1028_p3, %p1018_p2 }
  0x43   : > { %p1031_p4 = pneg %p1030_p5 }
  0x45   : > { %p1038_p11 = pnand %p1037_p6, %p1031_p4 }
  0x47   : > { %1041 = shalt.err (!%p1038_p11)
}
  0x48   : > { %s1644_s3 = sld [smem:[#allocation23_spill]]  ;;  %s39_s30 = sor.u32 %s38_s5, %s1362_s12 }
  0x49   : > { %s42_s15 = sadd.s32 1, %s1205_s23  ;;  %p40_p1 = scmp.eq.s32.totalorder %s39_s30, 0 }
  0x4a   : > { %p49_p8 = scmp.ne.s32.totalorder %s1205_s23, %s1201_s22  ;;  %p55_p9 = scmp.ne.s32.totalorder %s1201_s22, %s1197_s21 }
  0x4b   : > { %s197_s8 = sand.u32 1, %s1205_s23   ;;  %p1645_p2 = scmp.eq.s32.totalorder %s1225_s28, 0 }
  0x4c   : > { %s1438_s13 = scalar_select %p40_p1, %s1205_s23, %s42_s15  }
  0x4d   : > { %p51_p3 = por %p1645_p2, %p49_p8  ;;  %p1444_p5 = por %p1403_p10, %p55_p9 }
  0x4e   : > { %849 = dma.hbm_to_vmem [thread:$0]  (!%p847_p0), %s1644_s3, 128, %s187_s14, [#allocation9]  }
  0x4f   : > { %s795_s18 = sshll.u32 %s197_s8, 3  ;;  %s1647_s0 = sld [smem:[#allocation20_spill]] }
  0x50   : > { %s201_s12 = scalar_lea.vmem [#allocation3], %s795_s18  ;;  %p1648_p0 = scmp.lt.s32.totalorder %s1225_s28, 8 }
  0x51   : > { %s210_s5 = sshll.u32 %s201_s12, 4  ;;  %s198_s30 = scalar_lea.sflag [#allocation4], %s197_s8  ;;  %s211_s5 = int_to_ptr.vmem [resolvable:$true] %s210_s5 }
  0x52   : > { %p1454_p4 = pnand %p1648_p0, %p51_p3  ;;  %s1055_s15 = scalar_lea.vmem %s211_s5, 128 }
  0x53   : > { %p1056_p11 = scmp.ne.s32.totalorder %s211_s5, %s1055_s15  ;;  %s1229_s1 = smov [#allocation3]  }
  0x54   : > { %p1044_p6 = pneg %p1454_p4  ;;  %s1060_s3 = sshll.u32 %s1229_s1, 4  ;;  %s1061_s3 = int_to_ptr.vmem [resolvable:$false] %s1060_s3 }
  0x55   : > { %s208_s14 = scalar_lea.hbm %s1647_s0, %s1378_s16  ;;  %s1062_s25 = scalar_lea.vmem %s1061_s3, 256 }
  0x56   : > { %p1058_p1 = pnand %p1056_p11, %p1044_p6  ;;  %p1063_p9 = scmp.lt.s32.totalorder %s211_s5, %s1061_s3 }
  0x57   : > { %p1064_p2 = scmp.lt.s32.totalorder %s1062_s25, %s1055_s15 }
  0x58   : > { %p1059_p8 = pneg %p1058_p1 }
  0x59   : > { %p1065_p12 = por %p1064_p2, %p1063_p9 }
  0x5b   : > { %p1066_p3 = pnand %p1065_p12, %p1059_p8 }
  0x5d   : > { %1069 = shalt.err (!%p1066_p3)
}
  0x5e   : > { %s1650_s18 = sld [smem:[#allocation15_spill]]  ;;  %s102_s1 = sadd.s32 1, %s1181_s17 }
  0x5f   : > { %s1651_s8 = sld [smem:[#allocation14_spill]]  ;;  %p1652_p12 = scmp.eq.s32.totalorder %s1225_s28, 0 }
  0x60   : > { %853 = dma.hbm_to_vmem [thread:$0]  (!%p1454_p4), %s208_s14, 128, %s211_s5, %s198_s30  }
  0x61   : > { %s1468_s3 = scalar_select %p1366_p7, %s1181_s17, %s102_s1  }
  0x62   : > { %s240_s2 = sand.u32 1, %s1181_s17   ;;  %s1653_s15 = sld [smem:[#allocation22_spill]] }
  0x63   : > { %s799_s29 = sshll.u32 %s240_s2, 3  ;;  %p1655_p4 = scmp.lt.s32.totalorder %s1225_s28, 8 }
  0x64   : > { %p109_p0 = scmp.ne.s32.totalorder %s1181_s17, %s1650_s18  ;;  %s242_s5 = scalar_lea.vmem [#allocation7], %s799_s29 }
  0x65   : > { %p115_p11 = scmp.ne.s32.totalorder %s1650_s18, %s1651_s8  ;;  %s252_s30 = sshll.u32 %s242_s5, 4  ;;  %s253_s30 = int_to_ptr.vmem [resolvable:$true] %s252_s30 }
  0x66   : > { %p111_p6 = por %p109_p0, %p1652_p12  ;;  %s1083_s18 = scalar_lea.vmem %s253_s30, 128 }
  0x67   : > { %p1481_p1 = por %p115_p11, %p1403_p10  ;;  %p1084_p9 = scmp.ne.s32.totalorder %s253_s30, %s1083_s18 }
  0x68   : > { %s700_s25 = scalar_lea.hbm %s1653_s15, %s1378_s16  ;;  %p1487_p7 = pnand %p1655_p4, %p111_p6 }
  0x69   : > { %s701_s14 = scalar_lea.hbm %s700_s25, 1024  ;;  %s1230_s16 = smov [#allocation7]  }
  0x6a   : > { %p1072_p8 = pneg %p1487_p7  ;;  %s1088_s8 = sshll.u32 %s1230_s16, 4  ;;  %s1089_s8 = int_to_ptr.vmem [resolvable:$false] %s1088_s8 }
  0x6b   : > { %s1090_s1 = scalar_lea.vmem %s1089_s8, 256  ;;  %p1091_p0 = scmp.lt.s32.totalorder %s253_s30, %s1089_s8 }
  0x6c   : > { %p1086_p2 = pnand %p1084_p9, %p1072_p8  ;;  %p1092_p12 = scmp.lt.s32.totalorder %s1090_s1, %s1083_s18 }
  0x6e   : > { %p1087_p3 = pneg %p1086_p2  ;;  %p1093_p11 = por %p1092_p12, %p1091_p0 }
  0x70   : > { %p1094_p10 = pnand %p1093_p11, %p1087_p3 }
  0x72   : > { %1097 = shalt.err (!%p1094_p10)
}
  0x73   : > { %859 = dma.hbm_to_vmem [thread:$0]  (!%p1487_p7), %s701_s14, 128, %s253_s30, %s1392_s4  }
  0x74   : > { %261 = sbr.rel (%p1417_p13) target bundleno = 1652 (0x674), region = 36  ;;  %s263_s29 = sand.u32 (!%p1417_p13), 1, %s1201_s22  }
  0x75   : > { %s1499_s2 = sshll.u32 (!%p1417_p13), %s263_s29, 3  ;;  %s264_s12 = scalar_lea.sflag (!%p1417_p13), [#allocation4], %s263_s29 }
  0x76   : > { %s267_s21 = scalar_lea.vmem (!%p1417_p13), [#allocation3], %s1499_s2 }
  0x79   : > { %1156 = dma.done.wait (%p1444_p5), %s264_s12, 128  }
  0x7a   : > { %1158 = vsyncadd (%p1444_p5), %s264_s12, 4294967168  ;;  %s1657_s15 = sadd.s32 4294967295, %s1225_s28   ;;  %s274_s11 = sand.u32 1, %s1189_s19  }
  0x7b   : > { %s272_s4 = sand.u32 1, %s1657_s15   ;;  %s803_s25 = sshll.u32 %s274_s11, 3 }
  0x7c   : > { %s273_s14 = scalar_lea.sflag [#allocation6], %s272_s4  ;;  %s276_s5 = scalar_lea.vmem [#allocation5], %s803_s25 }
  0x7d   : > { %p1658_p10 = scmp.ne.s32.totalorder %s1642_s10, 0 }
  0x7f   : > { %1160 = dma.done.wait (%p1658_p10), %s273_s14, 128  }
  0x80   : > { %1162 = vsyncadd (%p1658_p10), %s273_s14, 4294967168  ;;  %s1659_s30 = sld [smem:[#allocation15_spill]] }
  0x86   : > { %s283_s7 = sand.u32 1, %s1659_s30  }
  0x87   : > { %s1514_s18 = sshll.u32 %s283_s7, 3 }
  0x88   : > { %s285_s6 = scalar_lea.vmem [#allocation7], %s1514_s18 }
  0x89   : > { %1164 = dma.done.wait (%p1481_p1), %s273_s14, 128  }
  0x8a   : > { %1166 = vsyncadd (%p1481_p1), %s273_s14, 4294967168  ;;  %p1660_p13 = scmp.ne.s32.totalorder %s1641_s9, 0 }
  0x8c   : > { %1168 = dma.done.wait (%p1660_p13), [#allocation9], 128  }
  0x8d   : > { %1170 = vsyncadd (%p1660_p13), [#allocation9], 4294967168  ;;  %s1661_s10 = sld [smem:[#allocation17_spill]] }
  0x8e   : > { %s1662_s29 = sld [smem:[#allocation24_spill]] }
  0x8f   : > { %s1663_s12 = sld [smem:[#allocation16_spill]] }
  0x93   : > { %p325_p5 = scmp.lt.s32.totalorder %s1661_s10, 1 }
  0x95   : > { %s1688_s10 = smov (!%p325_p5, %s1661_s10), 1  ;;  %p807_p6 = scmp.ne.s32.totalorder %s1663_s12, 0 }
  0x96   : > { %s806_s16 = sshll.u32 %s1688_s10, 3 }
  0x97   : > { %s1530_s2 = scalar_lea.vmem %s1662_s29, %s806_s16  ;;  %332 = sbr.rel (%p807_p6) target bundleno = 159 (0x9f), region = 56 }
  0x9c   : > { %vm333_vm0 = vcmask 31744   ;;  %vm335_vm1 = vcmask 7168   ;;  %v1231_v0 = vmov 0.0   ;;  %v1232_v1 = vmov -inf  }
  0x9d   : > { %334 = vst.msk [vmem:[#allocation2] sm:$0xff] %vm333_vm0, %v1231_v0 }
  0x9e   : > { %336 = vst.msk [vmem:[#allocation2] sm:$0xff] %vm335_vm1, %v1232_v1 }
  0x9f PF: > { %v337_v2 = vld [vmem:[%s267_s21] sm:$0xff]  ;;  %v340_v3 = vld [vmem:[#allocation8] sm:$0xff]  ;;  %vm341_vm2 = vcmask 64512   ;;  %v1233_v5 = vmov 0.0   ;;  %vm1234_vm3 = vmmov 0   ;;  %v560_v18 = vlaneseq  ;;  %s1235_s0 = smov 127  }
  0xa0   : > { %v1533_v4 = vld [vmem:[%s276_s5] sm:$0xff]  ;;  %820 = vmatprep.subr.mxu0 %v1233_v5  ;;  %822 = vmatprep.mubr.msk.f32.mxu0 %vm1234_vm3, %v1233_v5  ;;  %v1535_v6 = vld [vmem:[%s285_s6] sm:$0xff]  ;;  %vm593_vm4 = vcmask 7168   ;;  %s1236_s9 = smov 1   ;;  %vm605_vm9 = vcmask 15368   ;;  %s1237_s21 = smov 126  }
  0xa1   : > { %821 = vmatpush3.msra.mxu0 %v337_v2  ;;  %825 = vmatprep.subr.mxu1 %v1233_v5  ;;  %v561_v20 = vand.u32 127, %v560_v18  ;;  %s1238_s15 = smov 2   ;;  %vm617_vm10 = vcmask 23568   ;;  %s1239_s4 = smov 125   ;;  %vm629_vm11 = vcmask 31768  }
  0xa2   : > { %823 = vmatmul.mubr.msk.f32.vlgmr.msra.gmra.mxu0 %vm341_vm2, %v340_v3  ;;  %826 = vmatpush3.msra.mxu1 %v1533_v4  ;;  %s1240_s11 = smov 3   ;;  %s1664_s25 = sld [smem:[#allocation16_spill]] }
  0xa3   : > { %827 = vmatprep.mubr.msk.f32.mxu1 %vm1234_vm3, %v1233_v5  ;;  %830 = vmatprep.subr.mxu0 %v1233_v5 }
  0xa4   : > { %828 = vmatmul.mubr.msk.f32.vlgmr.msra.gmra.mxu1 %vm341_vm2, %v340_v3  ;;  %831 = vmatpush3.msra.mxu0 %v1535_v6 }
  0xa5   : > { %832 = vmatprep.mubr.msk.f32.mxu0 %vm1234_vm3, %v1233_v5  ;;  %v590_v19 = vld [vmem:[#allocation2] sm:$0xff] }
  0xa6   : > { %833 = vmatmul.mubr.msk.f32.vlgmr.msra.gmra.mxu0 %vm341_vm2, %v340_v3 }
  0xa8   : > { %p811_p1 = scmp.ne.s32.totalorder %s1664_s25, 3 }
  0xa9   : > { %s1241_s14 = smov (!%p811_p1), 127  }
 0x162   : > { %v411_v7 = vpop.f32.mrf.mxu0 }
 0x163   : > { %v555_v8 = vmul.f32 %v411_v7, %v337_v2 }
 0x164   : > { %v481_v9 = vpop.f32.mrf.mxu1  ;;  %v824_v10 = vpop.f32.mrf.mxu0 }
 0x165   : > { %v556_v11 = vmul.f32 %v481_v9, %v1533_v4 }
 0x166   : > { %v829_v12 = vpop.f32.mrf.mxu1  ;;  %v551_v13 = vpop.f32.mrf.mxu0 }
 0x167   : > { %v557_v14 = vadd.f32 %v556_v11, %v555_v8  ;;  %v558_v15 = vmul.f32 %v551_v13, %v1535_v6 }
 0x168   : > { %v834_v16 = vpop.f32.mrf.mxu0 }
 0x169   : > { %v559_v17 = vadd.f32 %v558_v15, %v557_v14 }
 0x16b   : > { %562 = vmax.xlane.f32.xlu0 %v559_v17 }
 0x1f4   : > { %v563_v21 = vpop.xlane.xlu0 %562 }
 0x1f5   : > { %vm564_vm5 = vcmp.eq.f32.partialorder %v559_v17, %v563_v21  ;;  %vm591_vm6 = vcmp.gt.f32.partialorder %v563_v21, %v590_v19 }
 0x1f6   : > { %v592_v22 = vsel %vm591_vm6, %v563_v21, %v590_v19  ;;  %v565_v23 = vsel %vm564_vm5, %v561_v20, 128 }
 0x1f7   : > { %594 = vst.msk [vmem:[#allocation2] sm:$0xff] %vm593_vm4, %v592_v22  ;;  %v567_v24 = vshra.s32 %v565_v23, 16  ;;  %v566_v27 = vand.u32 65535, %v565_v23 }
 0x1f9   : > { %v569_v25 = vcvt.s32.f32 %v567_v24  ;;  %v568_v29 = vcvt.s32.f32 %v566_v27 }
 0x1fb   : > { %570 = vmin.xlane.f32.xlu0 %v569_v25 }
 0x1fe   : > { %v595_v26 = vld [vmem:[#allocation2] sm:$0xff] }
 0x211   : > { %597 = vrot.lane.b32.xlu0 %v595_v26, %s1235_s0 }
 0x284   : > { %v571_v28 = vpop.xlane.xlu0 %570 }
 0x285   : > { %vm572_vm7 = vcmp.eq.f32.partialorder %v569_v25, %v571_v28  ;;  %v577_v31 = vcvt.f32.s32 %v571_v28 }
 0x286   : > { %v573_v30 = vsel %vm572_vm7, %v568_v29, inf }
 0x287   : > { %574 = vmin.xlane.f32.xlu1 %v573_v30  ;;  %v578_v33 = vshll.u32 %v577_v31, 16 }
 0x288   : > { %v598_v37 = vpop.permute.xlu0 %597 }
 0x310   : > { %v575_v32 = vpop.xlane.xlu1 %574 }
 0x311   : > { %v576_v34 = vcvt.f32.s32 %v575_v32 }
 0x313   : > { %v579_v35 = vadd.s32 %v578_v33, %v576_v34 }
 0x315   : > { %vm580_vm8 = vcmp.eq.s32.totalorder %v561_v20, %v579_v35 }
 0x316   : > { %v581_v36 = vsel %vm580_vm8, %v337_v2, 0.0  ;;  %v584_v40 = vsel %vm580_vm8, %v1533_v4, 0.0  ;;  %v587_v46 = vsel %vm580_vm8, %v1535_v6, 0.0 }
 0x317   : > { %582 = vadd.xlane.f32.xlu1 %v581_v36 }
 0x3a0   : > { %v583_v38 = vpop.xlane.xlu1 %582 }
 0x3a1   : > { %v600_v39 = vsel %vm591_vm6, %v583_v38, %v598_v37 }
 0x3a2   : > { %602 = vrot.lane.b32.xlu1 %v600_v39, %s1236_s9 }
 0x3c6   : > { %585 = vadd.xlane.f32.xlu1 %v584_v40 }
 0x414   : > { %v603_v41 = vpop.permute.xlu1 %602 }
 0x415   : > { %606 = vst.msk [vmem:[#allocation2] sm:$0xff] %vm605_vm9, %v603_v41 }
 0x41c   : > { %v607_v42 = vld [vmem:[#allocation2] sm:$0xff] }
 0x41d   : > { %609 = vrot.lane.b32.xlu0 %v607_v42, %s1237_s21 }
 0x44f   : > { %v586_v43 = vpop.xlane.xlu1 %585 }
 0x48f   : > { %v610_v44 = vpop.permute.xlu0 %609 }
 0x490   : > { %v612_v45 = vsel %vm591_vm6, %v586_v43, %v610_v44 }
 0x491   : > { %614 = vrot.lane.b32.xlu0 %v612_v45, %s1238_s15 }
 0x4b0   : > { %588 = vadd.xlane.f32.xlu0 %v587_v46 }
 0x503   : > { %v615_v47 = vpop.permute.xlu0 %614 }
 0x504   : > { %618 = vst.msk [vmem:[#allocation2] sm:$0xff] %vm617_vm10, %v615_v47 }
 0x50b   : > { %v619_v48 = vld [vmem:[#allocation2] sm:$0xff] }
 0x50c   : > { %621 = vrot.lane.b32.xlu1 %v619_v48, %s1239_s4 }
 0x539   : > { %v589_v49 = vpop.xlane.xlu0 %588 }
 0x57e   : > { %v622_v50 = vpop.permute.xlu1 %621 }
 0x57f   : > { %v624_v51 = vsel %vm591_vm6, %v589_v49, %v622_v50 }
 0x580   : > { %626 = vrot.lane.b32.xlu0 %v624_v51, %s1240_s11 }
 0x5ef   : > { %634 = sbr.rel (%p811_p1) target bundleno = 1652 (0x674), region = 60 }
 0x5f2   : > { %v627_v52 = vpop.permute.xlu0 %626 }
 0x5f3   : > { %630 = vst.msk [vmem:[#allocation2] sm:$0xff] %vm629_vm11, %v627_v52 }
 0x5fa   : > { %v635_v53 = vld [vmem:[#allocation2] sm:$0xff] }
 0x5fb   : > { %637 = vrot.lane.b32.xlu0 %v635_v53, %s1241_s14  ;;  %649 = vrot.lane.b32.xlu1 %v635_v53, %s1241_s14 }
 0x5ff   : > { %643 = vrot.lane.b32.xlu0 %v635_v53, %s1241_s14 }
 0x66d   : > { %v638_v54 = vpop.permute.xlu0 %637  ;;  %v650_v55 = vpop.permute.xlu1 %649 }
 0x66e   : > { %640 = vst.msk [vmem:[%s1530_s2] sm:$0xff] %vm593_vm4, %v638_v54 }
 0x671   : > { %v644_v56 = vpop.permute.xlu0 %643 }
 0x672   : > { %646 = vst.msk [vmem:[%s1530_s2] sm:$0xff] %vm605_vm9, %v644_v56 }
 0x673   : > { %652 = vst.msk [vmem:[%s1530_s2] sm:$0xff] %vm617_vm10, %v650_v55 }
 0x674 PF: > { %s21_s28 = sadd.s32 1, %s1225_s28   ;;  %s1666_s15 = sld [smem:[#allocation15_spill]] }
 0x675   : > { %p1564_p4 = scmp.ge.s32.totalorder %s21_s28, 10   ;;  %s1667_s30 = sld [smem:[#allocation18_spill]] }
 0x676   : > { %s1668_s7 = sld [smem:[#allocation19_spill]]  ;;  %s1669_s16 = smov %s1181_s17 }
 0x677   : > { %s1670_s17 = smov %s1468_s3  ;;  %s1671_s18 = smov %s1189_s19 }
 0x678   : > { %s1672_s19 = smov %s1193_s20  ;;  %s1673_s20 = smov %s1372_s24 }
 0x679   : > { %s1674_s21 = smov %s1201_s22  ;;  %s1675_s22 = smov %s1205_s23 }
 0x67a   : > { %s1676_s23 = smov %s1438_s13  ;;  %s1677_s24 = smov %s1217_s26 }
 0x67b   : > { %s1678_s25 = smov %s1221_s27  ;;  %s1679_s26 = smov %s1667_s30 }
 0x67c   : > { %s1680_s27 = smov %s1668_s7  ;;  %20 = sbr.rel (!%p1564_p4) target bundleno = 17 (0x11), region = 112 }
 0x681   :  { %672 = vsyncpa [#allocation4], 1 }
 0x682   :  { %674 = vsyncpa [#allocation4 + $0x1], 1 }
 0x683   :  { %675 = vsyncpa [#allocation6], 1 }
 0x684   :  { %677 = vsyncpa [#allocation6 + $0x1], 1 }
 0x685   :  { %678 = vsyncpa [#allocation9], 1 }

</bundles_post_ra>
